<compile_context>
chip_gen: v5e
topology: v5e:2x2
jax: 0.10.0
libtpu: 0.0.40
codegen_flags: <defaults>
</compile_context>

<pallas_src>
import functools

import numpy as np
import jax
import jax.numpy as jnp
from jax import lax
from jax.experimental import pallas as pl
from jax.experimental.pallas import tpu as pltpu


def _eye(n, dtype=jnp.float32):
    """Identity matrix built in-kernel from iota (no HBM input, no DMA)."""
    r = lax.broadcasted_iota(jnp.int32, (n, n), 0)
    c = lax.broadcasted_iota(jnp.int32, (n, n), 1)
    return (r == c).astype(dtype)


# ============================================================================ kernel A
def _graph_adj_kernel(svo_ref, w2s_ref, graph_ref, w2w_out, s2s_out):
    """create_similar_adj + create_sent2sent_type3 + graph thresholding, per BF tile."""
    x = svo_ref[...]                                               # (bt, NW, D) f32
    nw = x.shape[1]
    ns = graph_ref.shape[-1]

    # cosine adjacency: x * rsqrt(sum x^2) ~= x / (||x|| + 1e-8)   (EUP rsqrt)
    xn = x * lax.rsqrt(jnp.sum(x * x, axis=-1, keepdims=True) + 1e-16)
    xb = xn.astype(jnp.bfloat16)                                   # MXU operands in bf16
    cos = jnp.einsum('bnd,bmd->bnm', xb, xb,
                     preferred_element_type=jnp.float32)           # (bt, NW, NW)
    # NOTE: reference's non_zero_mask is numerically a no-op here: an all-zero
    # word row has xn == 0 -> cos == 0, which already fails the > 0.5 threshold.
    w2w_out[...] = (cos > 0.5).astype(jnp.float32) + _eye(nw)

    # sentence-sentence adjacency: (W^T W > 0) + I, OR'd with argument/punct graph.
    # In-VMEM transpose (values are exact 0/1, so bf16 matmul is exact).
    wT = jnp.swapaxes(w2s_ref[...], 1, 2).astype(jnp.bfloat16)     # (bt, NS, NW)
    s = jnp.einsum('bsw,btw->bst', wT, wT,
                   preferred_element_type=jnp.float32)             # (bt, NS, NS)
    s2s3 = (s > 0.0).astype(jnp.float32) + _eye(ns)
    s2s_out[...] = ((graph_ref[...] + s2s3) > 0.0).astype(jnp.float32)


def graph_adjacencies(svo_emb, word2sent_adj, graph, *, bf_tile):
    bf, nw, d = svo_emb.shape
    ns = word2sent_adj.shape[-1]
    assert bf % bf_tile == 0
    nt = bf // bf_tile
    spec = lambda shp: pl.BlockSpec((bf_tile,) + shp, lambda b: (b, 0, 0))
    return pl.pallas_call(
        _graph_adj_kernel,
        grid=(nt,),
        in_specs=[spec((nw, d)), spec((nw, ns)), spec((ns, ns))],
        out_specs=(spec((nw, nw)), spec((ns, ns))),
        out_shape=(jax.ShapeDtypeStruct((bf, nw, nw), jnp.float32),
                   jax.ShapeDtypeStruct((bf, ns, ns), jnp.float32)),
        compiler_params=pltpu.CompilerParams(
            dimension_semantics=("parallel",),
            vmem_limit_bytes=32 * 1024 * 1024),   # re-derive per generation (v7x: 64 MiB phys)
    )(svo_emb, word2sent_adj, graph)


# ============================================================================ kernel B
def _fused_forward_kernel(h_ref, g_ref, hp_ref, idx_ref, seq_ref, pm_ref, qm_ref,
                          pooled_ref, pk_ref, w1p_ref, w1q_ref, w1r_ref,
                          logit_ref, cl_ref, *, mix_weight):
    """SSL loss + 0.6/0.4 mix + token scatter (iota one-hot matmul) + LayerNorm
    residual + masked-softmax pooling + FFN head, one BF tile per grid step."""
    h_rep = h_ref[...]                                     # (bt, NS, D) f32
    g_rep = g_ref[...]
    bt, ns, d = h_rep.shape
    L = seq_ref.shape[1]

    # ---- SSL contrastive loss (BCE-with-logits, reduction='sum'); per-tile partial
    pos = jnp.sum(h_rep * g_rep, axis=-1)                  # (bt, NS)
    neg = jnp.sum(g_rep * hp_ref[...], axis=-1)            # (bt, NS)

    def bce_pos(x):  # target = 1
        return jnp.maximum(x, 0.0) - x + jnp.log1p(jnp.exp(-jnp.abs(x)))

    def bce_neg(x):  # target = 0
        return jnp.maximum(x, 0.0) + jnp.log1p(jnp.exp(-jnp.abs(x)))

    cl_ref[...] = jnp.reshape(jnp.sum(bce_pos(pos)) + jnp.sum(bce_neg(neg)), (1, 1, 1))

    # ---- sent_rep = 0.6 * HGCN + 0.4 * RGCN ------------------------------------
    sent_rep = mix_weight * h_rep + (1.0 - mix_weight) * g_rep      # (bt, NS, D)

    # ---- get_gcn_info_vector: one-hot built in-kernel from int32 token->node
    #      indices (no (BF,L,NS) HBM stream), applied as a single MXU matmul.
    idx = idx_ref[...][:, 0, :]                            # (bt, L) int32, -1 = no node
    node_iota = lax.broadcasted_iota(jnp.int32, (bt, L, ns), 2)
    tok_iota = lax.broadcasted_iota(jnp.int32, (bt, L, ns), 1)
    onehot = (idx[:, :, None] == node_iota).astype(jnp.float32)
    onehot = jnp.where(tok_iota == 0, 1.0 / ns, onehot)    # token 0 <- mean of node reps
    graph_info = jnp.einsum('bln,bnd->bld', onehot.astype(jnp.bfloat16),
                            sent_rep.astype(jnp.bfloat16),
                            preferred_element_type=jnp.float32)     # (bt, L, D)

    # ---- self.norm(sequence_output + graph_info_vec)   (f32 elementwise) -------
    pk = pk_ref[...]                                       # (8, D) packed param rows
    hseq = seq_ref[...] + graph_info
    mu = jnp.mean(hseq, axis=-1, keepdims=True)
    var = jnp.mean((hseq - mu) ** 2, axis=-1, keepdims=True)
    hseq = (hseq - mu) * lax.rsqrt(var + 1e-5) * pk[0] + pk[1]
    # TODO(synk): ResidualGRU (self.gru) is an external module with no definition; skipped.

    # ---- masked-softmax attention pooling (lane-dense: L on lane axis) ---------
    scores = jnp.sum(hseq * pk[2], axis=-1)                # (bt, L)
    pm = pm_ref[...][:, 0, :]
    qm = qm_ref[...][:, 0, :]

    def masked_softmax(v, m):     # AllenNLP non-memory-efficient variant
        x = v * m
        x = x - jnp.max(x, axis=-1, keepdims=True)
        e = jnp.exp(x)
        p = e * pl.reciprocal(jnp.sum(e, axis=-1, keepdims=True), approx=True)
        p = p * m
        return p * pl.reciprocal(jnp.sum(p, axis=-1, keepdims=True) + 1e-13, approx=True)

    pw = masked_softmax(scores, pm)                        # (bt, L)
    qw = masked_softmax(scores, qm)
    # stack both pooling matvecs into a single M=2 MXU matmul (iota-select, no concat)
    k_iota = lax.broadcasted_iota(jnp.int32, (bt, 2, L), 1)
    w_stack = jnp.where(k_iota == 0, pw[:, None, :], qw[:, None, :]).astype(jnp.bfloat16)
    pooled_pq = jnp.einsum('bkl,bld->bkd', w_stack, hseq.astype(jnp.bfloat16),
                           preferred_element_type=jnp.float32)       # (bt, 2, D)
    p_h2 = pooled_pq[:, 0]
    q_h2 = pooled_pq[:, 1]
    pooled = pooled_ref[...][:, 0, :]                      # (bt, D)
    # TODO(synk): self.dropout on pooled_output is identity at inference; omitted.

    # ---- FFN head: w1 pre-split into three resident DxD blocks (no feats concat)
    hh = (jnp.dot(p_h2.astype(jnp.bfloat16), w1p_ref[...], preferred_element_type=jnp.float32)
          + jnp.dot(q_h2.astype(jnp.bfloat16), w1q_ref[...], preferred_element_type=jnp.float32)
          + jnp.dot(pooled.astype(jnp.bfloat16), w1r_ref[...], preferred_element_type=jnp.float32)
          + pk[3])
    # tanh-approx GELU (FFNLayer source is external; nn.GELU default erf form differs slightly)
    hh = 0.5 * hh * (1.0 + jnp.tanh(0.7978845608028654 * (hh + 0.044715 * hh * hh * hh)))
    mu2 = jnp.mean(hh, axis=-1, keepdims=True)
    var2 = jnp.mean((hh - mu2) ** 2, axis=-1, keepdims=True)
    hh = (hh - mu2) * lax.rsqrt(var2 + 1e-5) * pk[4] + pk[5]
    logit = jnp.sum(hh * pk[6], axis=-1) + pk[7, 0:1]      # (bt,)
    logit_ref[...] = jnp.reshape(logit, (1, 1, bt))        # lane-dense per-tile row


def fused_forward(h_rep, g_rep, hgcn_perm, node_idx, seq_out,
                  passage_mask, question_mask, pooled, params, *,
                  mix_weight, bf_tile):
    bf, L, d = seq_out.shape
    ns = h_rep.shape[1]
    assert bf % bf_tile == 0
    nt = bf // bf_tile

    # 3D views of the narrow side inputs -> any bf_tile satisfies the (8,128) rule
    pm = passage_mask.astype(jnp.float32)[:, None, :]      # (BF, 1, L)
    qm = question_mask.astype(jnp.float32)[:, None, :]
    pooled3 = pooled[:, None, :]                           # (BF, 1, D)

    # pack the eight per-feature parameter vectors into one (8, D) input (one DMA)
    pack = jnp.stack([
        params["norm_g"], params["norm_b"], params["proj_w"],
        params["b1"].reshape(-1), params["ln_g"].reshape(-1),
        params["ln_b"].reshape(-1), params["w2"].reshape(-1),
        jnp.full((d,), params["b2"].reshape(())),
    ], axis=0).astype(jnp.float32)

    # FFN first-layer weight split into three DxD blocks, bf16 (MXU native, half DMA)
    w1 = params["w1"]
    w1p = w1[:d].astype(jnp.bfloat16)
    w1q = w1[d:2 * d].astype(jnp.bfloat16)
    w1r = w1[2 * d:].astype(jnp.bfloat16)

    batch3 = lambda shp: pl.BlockSpec((bf_tile,) + shp, lambda b: (b, 0, 0))
    resident = lambda shp: pl.BlockSpec(shp, lambda b: (0, 0))

    logits_t, cl_t = pl.pallas_call(
        functools.partial(_fused_forward_kernel, mix_weight=mix_weight),
        grid=(nt,),
        in_specs=[batch3((ns, d)), batch3((ns, d)), batch3((ns, d)),
                  batch3((1, L)), batch3((L, d)),
                  batch3((1, L)), batch3((1, L)), batch3((1, d)),
                  resident((8, d)), resident((d, d)), resident((d, d)),
                  resident((d, d))],
        out_specs=(pl.BlockSpec((1, 1, bf_tile), lambda b: (b, 0, 0)),
                   pl.BlockSpec((1, 1, 1), lambda b: (b, 0, 0))),
        out_shape=(jax.ShapeDtypeStruct((nt, 1, bf_tile), jnp.float32),
                   jax.ShapeDtypeStruct((nt, 1, 1), jnp.float32)),
        compiler_params=pltpu.CompilerParams(
            dimension_semantics=("parallel",),           # shard BF tiles across TCs (v7x)
            vmem_limit_bytes=32 * 1024 * 1024),          # above v5e's 16 MiB scoped default
    )(h_rep, g_rep, hgcn_perm, node_idx, seq_out, pm, qm, pooled3,
      pack, w1p, w1q, w1r)
    return logits_t.reshape(bf), jnp.sum(cl_t)            # per-tile SSL partials -> sum


# ============================================================================ glue
def build_node_token_index(node_in_seq_indices, bf, seq_len):
    """Token -> sentence-node index map (-1 = no node) replacing get_gcn_info_vector's
    python scatter loops; last node wins, matching the reference scatter order.
    Token 0 is handled in-kernel (uniform mean over node reps)."""
    idx = np.full((bf, seq_len), -1, np.int32)
    for b in range(bf):
        for n, ids in enumerate(node_in_seq_indices[b]):
            for t in ids:
                idx[b, t] = n
    return jnp.asarray(idx)[:, None, :]                   # (BF, 1, L)


def cross_entropy(logits, labels):
    logp = jax.nn.log_softmax(logits, axis=-1)
    return -jnp.mean(jnp.take_along_axis(logp, labels[:, None], axis=-1))


def mulor_forward(params, data, *, bf_tile=2):
    D = params["dim"]
    weight, scale = 0.6, 1e-5
    BF, L, _ = data["sequence_output"].shape
    NS = data["sent_rep_HGCN"].shape[1]

    # --- graph-construction hot paths (inputs to the external RGCN/HGCN) -------
    words2words_adj, sent2sent_adj = graph_adjacencies(
        data["SVO_emb"], data["word2sent_adj"], data["graph"], bf_tile=bf_tile)

    # --- RGCN/HGCN outputs are stand-ins (external modules) --------------------
    h_rep, g_rep = data["sent_rep_HGCN"], data["sent_rep_GCN"]
    hgcn_perm = h_rep.reshape(-1, D)[data["perm"]].reshape(BF, NS, D)   # randperm stand-in

    # --- token -> node index map (trace-time python index lists) ---------------
    node_idx = build_node_token_index(data["node_in_seq_indices"], BF, L)

    # --- fused: SSL + mix + scatter + LayerNorm + attn pooling + FFN head ------
    logits, cl_loss = fused_forward(
        h_rep, g_rep, hgcn_perm, node_idx,
        data["sequence_output"], data["passage_mask"], data["question_mask"],
        data["pooled_output"], params, mix_weight=weight, bf_tile=bf_tile)

    reshaped_logits = logits.reshape(-1, data["num_choices"])
    loss = cross_entropy(reshaped_logits, data["labels"]) + scale * cl_loss
    return loss, reshaped_logits, (words2words_adj, sent2sent_adj)


# ============================================================================ main
if __name__ == "__main__":
    B, C, L, D = 2, 2, 16, 32          # batch, num_choices, seq_len, hidden
    BF = B * C                         # flattened (batch * num_choices)
    NW, NS = 8, 6                      # SVO (word) nodes, sentence nodes
    BF_TILE = 2                        # -> grid=(2,), two parallel BF tiles

    key = jax.random.PRNGKey(0)
    ks = jax.random.split(key, 16)

    # Deterministic parameters (shapes from MuLoR.__init__ with hidden=D).
    params = {
        "dim": D,
        "norm_g": jnp.ones((D,), jnp.float32),
        "norm_b": jnp.zeros((D,), jnp.float32),
        "proj_w": 0.02 * jax.random.normal(ks[0], (D,), jnp.float32),
        "w1": 0.02 * jax.random.normal(ks[1], (3 * D, D), jnp.float32),
        "b1": jnp.zeros((1, D), jnp.float32),
        "ln_g": jnp.ones((1, D), jnp.float32),
        "ln_b": jnp.zeros((1, D), jnp.float32),
        "w2": 0.02 * jax.random.normal(ks[2], (D, 1), jnp.float32),
        "b2": jnp.zeros((1, 1), jnp.float32),
    }

    # Deterministic stand-ins for outputs of external modules / CPU graph building.
    graph = (jax.random.uniform(ks[8], (BF, NS, NS)) > 0.6).astype(jnp.float32)
    graph = jnp.maximum(graph, jnp.eye(NS)[None])
    data = {
        "num_choices": C,
        "sequence_output": jax.random.normal(ks[3], (BF, L, D), jnp.float32),
        "pooled_output": jax.random.normal(ks[4], (BF, D), jnp.float32),
        "SVO_emb": jax.random.normal(ks[5], (BF, NW, D), jnp.float32),
        "sent_rep_HGCN": jax.random.normal(ks[6], (BF, NS, D), jnp.float32),
        "sent_rep_GCN": jax.random.normal(ks[7], (BF, NS, D), jnp.float32),
        "graph": graph,
        "word2sent_adj": (jax.random.uniform(ks[9], (BF, NW, NS)) > 0.5).astype(jnp.float32),
        "passage_mask": jnp.concatenate(
            [jnp.zeros((BF, 1)), jnp.ones((BF, 9)), jnp.zeros((BF, L - 10))], axis=1),
        "question_mask": jnp.concatenate(
            [jnp.zeros((BF, 10)), jnp.ones((BF, 5)), jnp.zeros((BF, L - 15))], axis=1),
        "node_in_seq_indices": [[[1, 2], [4], [6, 7], [9], [11, 12], [14]]
                                for _ in range(BF)],
        "perm": jax.random.permutation(ks[10], BF * NS),
        "labels": jax.random.randint(ks[11], (B,), 0, C),
    }

    loss, logits, adjs = mulor_forward(params, data, bf_tile=BF_TILE)
    jax.block_until_ready((loss, logits, adjs))
    print("KERNEL_OK")
</pallas_src>

<mosaic_0001>
module attributes {stable_mosaic.version = 11 : i64} {
  func.func @_graph_adj_kernel(%arg0: i32, %arg1: memref<2x8x32xf32, #tpu.memory_space<vmem>>, %arg2: memref<2x8x6xf32, #tpu.memory_space<vmem>>, %arg3: memref<2x6x6xf32, #tpu.memory_space<vmem>>, %arg4: memref<2x8x8xf32, #tpu.memory_space<vmem>>, %arg5: memref<2x6x6xf32, #tpu.memory_space<vmem>>) attributes {dimension_semantics = [#tpu.dimension_semantics<parallel>], iteration_bounds = array<i64: 2>, scalar_prefetch = 0 : i64, scratch_operands = 0 : i64, tpu.core_type = #tpu.core_type<tc>, window_params = [{transform_indices = @transform_0, window_bounds = array<i64: 2, 8, 32>}, {transform_indices = @transform_1, window_bounds = array<i64: 2, 8, 6>}, {transform_indices = @transform_2, window_bounds = array<i64: 2, 6, 6>}, {transform_indices = @transform_3, window_bounds = array<i64: 2, 8, 8>}, {transform_indices = @transform_4, window_bounds = array<i64: 2, 6, 6>}]} {
    %c0 = arith.constant 0 : index
    %c0_0 = arith.constant 0 : index
    %c0_1 = arith.constant 0 : index
    %0 = vector.load %arg1[%c0, %c0_0, %c0_1] : memref<2x8x32xf32, #tpu.memory_space<vmem>>, vector<2x8x32xf32>
    %1 = arith.mulf %0, %0 : vector<2x8x32xf32>
    %cst = arith.constant dense<0.000000e+00> : vector<2x8xf32>
    %2 = vector.multi_reduction <add>, %1, %cst [2] : vector<2x8x32xf32> to vector<2x8xf32>
    %3 = vector.shape_cast %2 : vector<2x8xf32> to vector<2x8x1xf32>
    %cst_2 = arith.constant 1.000000e-16 : f32
    %4 = vector.broadcast %cst_2 : f32 to vector<2x8x1xf32>
    %5 = arith.addf %3, %4 : vector<2x8x1xf32>
    %6 = math.rsqrt %5 : vector<2x8x1xf32>
    %7 = vector.broadcast %6 : vector<2x8x1xf32> to vector<2x8x32xf32>
    %8 = arith.mulf %0, %7 : vector<2x8x32xf32>
    %9 = arith.truncf %8 : vector<2x8x32xf32> to vector<2x8x32xbf16>
    "tpu.trace_start"() <{level = 10 : i32, message = "bnd,bmd->bnm"}> : () -> ()
    %cst_3 = arith.constant dense<0.000000e+00> : vector<2x8x8xf32>
    %10 = tpu.matmul %9, %9, %cst_3 {dimension_numbers = #tpu.dot_dimension_numbers<[2], [2], [1], [1], [0, 0, 0, 1, 1, 1], [0], [0]>} : vector<2x8x32xbf16>, vector<2x8x32xbf16>, vector<2x8x8xf32> -> vector<2x8x8xf32>
    %cst_4 = arith.constant 5.000000e-01 : f32
    "tpu.trace_stop"() : () -> ()
    %11 = vector.broadcast %cst_4 : f32 to vector<2x8x8xf32>
    %12 = arith.cmpf ogt, %10, %11 : vector<2x8x8xf32>
    %13 = arith.extui %12 : vector<2x8x8xi1> to vector<2x8x8xi32>
    %14 = arith.sitofp %13 : vector<2x8x8xi32> to vector<2x8x8xf32>
    %15 = tpu.iota {dimensions = array<i32: 0>} : vector<8x8xi32>
    %16 = tpu.iota {dimensions = array<i32: 1>} : vector<8x8xi32>
    %17 = arith.cmpi eq, %15, %16 : vector<8x8xi32>
    %18 = arith.extui %17 : vector<8x8xi1> to vector<8x8xi32>
    %19 = arith.sitofp %18 : vector<8x8xi32> to vector<8x8xf32>
    %20 = vector.shape_cast %19 : vector<8x8xf32> to vector<1x8x8xf32>
    %21 = vector.broadcast %20 : vector<1x8x8xf32> to vector<2x8x8xf32>
    %22 = arith.addf %14, %21 : vector<2x8x8xf32>
    %c0_5 = arith.constant 0 : index
    %c0_6 = arith.constant 0 : index
    %c0_7 = arith.constant 0 : index
    %23 = vector.load %arg4[%c0_5, %c0_6, %c0_7] : memref<2x8x8xf32, #tpu.memory_space<vmem>>, vector<2x8x8xf32>
    tpu.vector_store %arg4[%c0_5, %c0_6, %c0_7], %22 {strides = array<i32>} : memref<2x8x8xf32, #tpu.memory_space<vmem>>, vector<2x8x8xf32>,
    %c0_8 = arith.constant 0 : index
    %c0_9 = arith.constant 0 : index
    %c0_10 = arith.constant 0 : index
    %24 = vector.load %arg2[%c0_8, %c0_9, %c0_10] : memref<2x8x6xf32, #tpu.memory_space<vmem>>, vector<2x8x6xf32>
    %25 = tpu.transpose %24, [0, 2, 1] : vector<2x8x6xf32> -> vector<2x6x8xf32>
    %26 = arith.truncf %25 : vector<2x6x8xf32> to vector<2x6x8xbf16>
    "tpu.trace_start"() <{level = 10 : i32, message = "bsw,btw->bst"}> : () -> ()
    %cst_11 = arith.constant dense<0.000000e+00> : vector<2x6x6xf32>
    %27 = tpu.matmul %26, %26, %cst_11 {dimension_numbers = #tpu.dot_dimension_numbers<[2], [2], [1], [1], [0, 0, 0, 1, 1, 1], [0], [0]>} : vector<2x6x8xbf16>, vector<2x6x8xbf16>, vector<2x6x6xf32> -> vector<2x6x6xf32>
    %cst_12 = arith.constant 0.000000e+00 : f32
    "tpu.trace_stop"() : () -> ()
    %28 = vector.broadcast %cst_12 : f32 to vector<2x6x6xf32>
    %29 = arith.cmpf ogt, %27, %28 : vector<2x6x6xf32>
    %30 = arith.extui %29 : vector<2x6x6xi1> to vector<2x6x6xi32>
    %31 = arith.sitofp %30 : vector<2x6x6xi32> to vector<2x6x6xf32>
    %32 = tpu.iota {dimensions = array<i32: 0>} : vector<6x6xi32>
    %33 = tpu.iota {dimensions = array<i32: 1>} : vector<6x6xi32>
    %34 = arith.cmpi eq, %32, %33 : vector<6x6xi32>
    %35 = arith.extui %34 : vector<6x6xi1> to vector<6x6xi32>
    %36 = arith.sitofp %35 : vector<6x6xi32> to vector<6x6xf32>
    %37 = vector.shape_cast %36 : vector<6x6xf32> to vector<1x6x6xf32>
    %38 = vector.broadcast %37 : vector<1x6x6xf32> to vector<2x6x6xf32>
    %39 = arith.addf %31, %38 : vector<2x6x6xf32>
    %c0_13 = arith.constant 0 : index
    %c0_14 = arith.constant 0 : index
    %c0_15 = arith.constant 0 : index
    %40 = vector.load %arg3[%c0_13, %c0_14, %c0_15] : memref<2x6x6xf32, #tpu.memory_space<vmem>>, vector<2x6x6xf32>
    %41 = arith.addf %40, %39 : vector<2x6x6xf32>
    %cst_16 = arith.constant 0.000000e+00 : f32
    %42 = vector.broadcast %cst_16 : f32 to vector<2x6x6xf32>
    %43 = arith.cmpf ogt, %41, %42 : vector<2x6x6xf32>
    %44 = arith.extui %43 : vector<2x6x6xi1> to vector<2x6x6xi32>
    %45 = arith.sitofp %44 : vector<2x6x6xi32> to vector<2x6x6xf32>
    %c0_17 = arith.constant 0 : index
    %c0_18 = arith.constant 0 : index
    %c0_19 = arith.constant 0 : index
    %46 = vector.load %arg5[%c0_17, %c0_18, %c0_19] : memref<2x6x6xf32, #tpu.memory_space<vmem>>, vector<2x6x6xf32>
    tpu.vector_store %arg5[%c0_17, %c0_18, %c0_19], %45 {strides = array<i32>} : memref<2x6x6xf32, #tpu.memory_space<vmem>>, vector<2x6x6xf32>,
    return
  }
  func.func @transform_0(%arg0: i32) -> (i32, i32, i32) {
    %c0_i32 = arith.constant 0 : i32
    %c0_i32_0 = arith.constant 0 : i32
    %c0_i32_1 = arith.constant 0 : i32
    return %arg0, %c0_i32, %c0_i32_0 : i32, i32, i32
  }
  func.func @transform_1(%arg0: i32) -> (i32, i32, i32) {
    %c0_i32 = arith.constant 0 : i32
    %c0_i32_0 = arith.constant 0 : i32
    %c0_i32_1 = arith.constant 0 : i32
    return %arg0, %c0_i32, %c0_i32_0 : i32, i32, i32
  }
  func.func @transform_2(%arg0: i32) -> (i32, i32, i32) {
    %c0_i32 = arith.constant 0 : i32
    %c0_i32_0 = arith.constant 0 : i32
    %c0_i32_1 = arith.constant 0 : i32
    return %arg0, %c0_i32, %c0_i32_0 : i32, i32, i32
  }
  func.func @transform_3(%arg0: i32) -> (i32, i32, i32) {
    %c0_i32 = arith.constant 0 : i32
    %c0_i32_0 = arith.constant 0 : i32
    %c0_i32_1 = arith.constant 0 : i32
    return %arg0, %c0_i32, %c0_i32_0 : i32, i32, i32
  }
  func.func @transform_4(%arg0: i32) -> (i32, i32, i32) {
    %c0_i32 = arith.constant 0 : i32
    %c0_i32_0 = arith.constant 0 : i32
    %c0_i32_1 = arith.constant 0 : i32
    return %arg0, %c0_i32, %c0_i32_0 : i32, i32, i32
  }
}

</mosaic_0001>

<bundles_post_ra>
// kernel: tpu_custom_call.1
= control target key start
LH: loop header
LB: loop body
LE: loop exit
PB: predicated region body
PF: predicated region fallthrough
CT: control target
= control target key end

     0   :  { %10 = vsyncpa [#allocation3], 0  ;;  %s888_s0 = inlined_call_operand.vmem [shape: f32[4,8,32], index: 0, kind: input, shape index: {}]   ;;  %s889_s1 = inlined_call_operand.vmem [shape: f32[4,8,6], index: 1, kind: input, shape index: {}]   ;;  %s890_s2 = inlined_call_operand.vmem [shape: f32[4,6,6], index: 2, kind: input, shape index: {}]   ;;  %s891_s3 = inlined_call_operand.hbm [shape: f32[4,8,8], index: 3, kind: output, shape index: {0}]   ;;  %s892_s4 = inlined_call_operand.vmem [shape: f32[4,6,6], index: 4, kind: output, shape index: {1}]  }
   0x1   :  { %12 = vsyncpa [#allocation3 + $0x1], 0  ;;  %s777_s15 = smov 0   ;;  %s779_s16 = smov 0  }
   0x2   :  { %s781_s17 = smov 0   ;;  %s783_s18 = smov 0  }
   0x3 LB: > { %s798_s19 = sadd.s32 4294967295, %s747_s18   ;;  %s602_s20 = sadd.s32 4294967294, %s747_s18   ;;  %s747_s18 = sphi %s783_s18, %s898_s18   ;;  %s743_s17 = sphi %s781_s17, %s897_s17   ;;  %s739_s16 = sphi %s779_s16, %s896_s16   ;;  %s735_s15 = sphi %s777_s15, %s895_s15  }
   0x4   : > { %s802_s21 = sadd.s32 1, %s747_s18   ;;  %s103_s22 = sadd.s32 1, %s743_s17 }
   0x5   : > { %s100_s23 = ssub.s32 %s747_s18, %s802_s21  ;;  %p113_p0 = scmp.ne.s32.totalorder %s743_s17, %s739_s16 }
   0x6   : > { %p101_p1 = scmp.eq.s32.totalorder %s100_s23, 0  ;;  %p114_p2 = scmp.eq.s32.totalorder %s798_s19, 1 }
   0x7   : > { %p119_p3 = scmp.ne.s32.totalorder %s739_s16, %s735_s15  ;;  %p120_p4 = scmp.eq.s32.totalorder %s602_s20, 1 }
   0x8   : > { %s813_s24 = scalar_select %p101_p1, %s743_s17, %s103_s22  }
   0x9   : > { %p815_p5 = por %p114_p2, %p113_p0  ;;  %p819_p6 = por %p120_p4, %p119_p3 }
   0xa   : > { %p605_p7 = scmp.ge.s32.totalorder %s747_s18, 1  ;;  %p191_p8 = scmp.lt.s32.totalorder %s747_s18, 3 }
   0xc   : > { %p192_p9 = pnand %p605_p7, %p191_p8 }
   0xd   : > { %s607_s27 = sshll.u32 (!%p192_p9), %s798_s19, 1  ;;  %s222_s9 = sand.u32 (!%p192_p9), 1, %s739_s16  }
   0xe   : > { %195 = sbr.rel (%p192_p9) target bundleno = 344 (0x158), region = 32  ;;  %p233_p10 = scmp.lt.s32.totalorder (!%p192_p9), %s607_s27, 3 }
   0xf   : > { %s606_s10 = sshll.u32 (!%p192_p9), %s222_s9, 4  ;;  %s631_s11 = sshll.u32 (!%p192_p9), %s798_s19, 4 }
  0x10   : > { %s483_s14 = scalar_lea.hbm (!%p192_p9), %s891_s3, %s631_s11  ;;  %s224_s20 = scalar_lea.vmem (!%p192_p9), [#allocation2], %s606_s10 }
  0x11   : > { %s484_s22 = sshll.u32 (!%p192_p9), %s224_s20, 4  ;;  %s486_s23 = sshll.u32 (!%p192_p9), %s483_s14, 4  ;;  %s485_s22 = int_to_ptr.vmem [resolvable:$true] %s484_s22  ;;  %s487_s23 = int_to_ptr.hbm [resolvable:$true] %s486_s23 }
  0x12   : > { %s467_s19 = scalar_lea.sflag (!%p192_p9), [#allocation3], %s222_s9  ;;  %s705_s6 = scalar_lea.hbm (!%p192_p9), %s891_s3, 32 }
  0x13   : > { %s900_s27 = smov (!%p233_p10, %s607_s27), 3  ;;  %vm262_vm0 = vcmask 261120   ;;  %vm342_vm7 = vcmask 64512   ;;  %v333_v40 = vlaneseq  ;;  %v749_v44 = vmov 0.0  }
  0x14   : > { %s826_s28 = sshll.u32 %s900_s27, 3  ;;  %s699_s27 = sshra.s32 %s487_s23, 4  ;;  %s700_s27 = int_to_ptr.hbm [resolvable:$true] %s699_s27 }
  0x15   : > { %s242_s5 = scalar_lea.vmem %s889_s1, %s826_s28  ;;  %s236_s8 = scalar_lea.vmem %s888_s0, %s826_s28  ;;  %v334_v41 = vshrl.u32 %v333_v40, 7  ;;  %v336_v42 = vand.u32 127, %v333_v40 }
  0x16   : > { %v345_v0 = vld [vmem:[%s242_s5] sm:$0xff]  ;;  %v346_v1 = vld [vmem:[%s242_s5 + $0x8] sm:$0xff]  ;;  %s701_s29 = scalar_lea.hbm %s700_s27, 16  ;;  %p706_p0 = scmp.lt.s32.totalorder %s700_s27, %s891_s3 }
  0x17   : > { %v674_v2 = vpack.i.bf16 %v346_v1, %v345_v0  ;;  %v258_v3 = vld [vmem:[%s236_s8] sm:$0xff]  ;;  %v259_v5 = vld [vmem:[%s236_s8 + $0x8] sm:$0xff]  ;;  %vm337_vm8 = vcmp.eq.s32.totalorder %v334_v41, %v336_v42  ;;  %p702_p11 = scmp.ne.s32.totalorder %s700_s27, %s701_s29  ;;  %p707_p1 = scmp.lt.s32.totalorder %s705_s6, %s701_s29 }
  0x18   : > { %v260_v4 = vmul.f32 %v258_v3, %v258_v3  ;;  %v261_v7 = vmul.f32 %v259_v5, %v259_v5  ;;  %v619_v45 = vsel %vm337_vm8, 1.0, %v749_v44 }
  0x19   : > { %675 = vxpose.xlu1.b32.start.end [1/1] (short) (narrow) %v674_v2, 8  ;;  %p703_p12 = pnand %p702_p11, %p815_p5  ;;  %p708_p2 = por %p707_p1, %p706_p0 }
  0x1a   : > { %v263_v6 = vsel %vm262_vm0, %v260_v4, 0.0  ;;  %v266_v8 = vsel %vm262_vm0, %v261_v7, 0.0 }
  0x1b   : > { %264 = vadd.xlane.f32.xlu0 %v263_v6  ;;  %p704_p13 = pneg %p703_p12 }
  0x1d   : > { %p709_p3 = pnand %p708_p2, %p704_p13 }
  0x23   : > { %267 = vadd.xlane.f32.xlu0 %v266_v8 }
  0x8e   : > { %v265_v9 = vpop.xlane.xlu0 %264 }
  0x8f   : > { %v269_v10 = vadd.f32 1e-16, %v265_v9 }
  0x91   : > { %681 = vrsqrt.f32 %v269_v10  ;;  %vm277_vm1 = vweird.f32 %v269_v10 }
  0x96   : > { %v268_v11 = vpop.xlane.xlu0 %267 }
  0x97   : > { %v682_v12 = vpop.eup %681  ;;  %v270_v13 = vadd.f32 1e-16, %v268_v11 }
  0x98   : > { %v272_v14 = vmul.f32 %v682_v12, %v269_v10  ;;  %vm278_vm2 = vweird.f32 %v682_v12 }
  0x99   : > { %683 = vrsqrt.f32 %v270_v13  ;;  %vm279_vm3 = vmor %vm277_vm1, %vm278_vm2  ;;  %vm287_vm4 = vweird.f32 %v270_v13 }
  0x9a   : > { %v273_v15 = vmul.f32 %v682_v12, %v272_v14 }
  0x9c   : > { %v274_v16 = vmul.f32 0.5, %v273_v15 }
  0x9e   : > { %v275_v17 = vsub.f32 1.5, %v274_v16 }
  0x9f   : > { %v684_v18 = vpop.eup %683 }
  0xa0   : > { %v282_v19 = vmul.f32 %v684_v18, %v270_v13  ;;  %v276_v20 = vmul.f32 %v682_v12, %v275_v17  ;;  %vm288_vm5 = vweird.f32 %v684_v18 }
  0xa1   : > { %vm289_vm6 = vmor %vm287_vm4, %vm288_vm5 }
  0xa2   : > { %v283_v21 = vmul.f32 %v684_v18, %v282_v19  ;;  %v280_v22 = vsel %vm279_vm3, %v682_v12, %v276_v20 }
  0xa3   : > { %v291_v23 = vmul.f32 %v280_v22, %v258_v3 }
  0xa4   : > { %v284_v24 = vmul.f32 0.5, %v283_v21 }
  0xa5   : > { %v293_v25 = vpack.c.bf16 %v291_v23, %v291_v23 }
  0xa6   : > { %v285_v26 = vsub.f32 1.5, %v284_v24 }
  0xa7   : > { %v296_v27 = vsel %vm262_vm0, %v293_v25, 0 }
  0xa8   : > { %305 = vmatpush.bf16.xpose.msra.mxu0 %v296_v27  ;;  %v286_v28 = vmul.f32 %v684_v18, %v285_v26 }
  0xaa   : > { %v290_v29 = vsel %vm289_vm6, %v684_v18, %v286_v28 }
  0xab   : > { %v292_v30 = vmul.f32 %v290_v29, %v259_v5 }
  0xad   : > { %v294_v31 = vpack.c.bf16 %v292_v30, %v292_v30 }
  0xaf   : > { %615 = vmatmul.msk.bf16.vlgmr.msra.gmra.mxu0 %vm262_vm0, %v293_v25  ;;  %v312_v32 = vsel %vm262_vm0, %v294_v31, 0 }
  0xb0   : > { %321 = vmatpush.bf16.xpose.msra.mxu1 %v312_v32 }
  0xb7   : > { %616 = vmatmul.msk.bf16.vlgmr.msra.gmra.mxu1 %vm262_vm0, %v294_v31 }
  0xbd   : > { %v676_v33 = vpop.trf.xlu1 }
  0xbe   : > { %v677_v34 = vunpack.i.l.bf16 %v676_v33  ;;  %v680_v35 = vunpack.i.h.bf16 %v676_v33 }
  0xc0   : > { %v411_v36 = vpack.c.bf16 %v677_v34, %v677_v34  ;;  %v412_v37 = vpack.c.bf16 %v680_v35, %v680_v35 }
  0xc2   : > { %v414_v38 = vsel %vm342_vm7, %v411_v36, 0  ;;  %v430_v39 = vsel %vm342_vm7, %v412_v37, 0 }
  0xc3   : > { %423 = vmatpush.bf16.xpose.msra.mxu2 %v414_v38  ;;  %439 = vmatpush.bf16.xpose.msra.mxu3 %v430_v39 }
  0xca   : > { %620 = vmatmul.msk.bf16.vlgmr.msra.gmra.mxu2 %vm342_vm7, %v411_v36  ;;  %621 = vmatmul.msk.bf16.vlgmr.msra.gmra.mxu3 %vm342_vm7, %v412_v37 }
 0x12c   : > { %v307_v43 = vpop.f32.mrf.mxu0 }
 0x12d   : > { %vm327_vm9 = vcmp.gt.f32.partialorder %v307_v43, 0.5 }
 0x12e   : > { %v617_v46 = vsel %vm327_vm9, 1.0, %v749_v44 }
 0x12f   : > { %v340_v47 = vadd.f32 %v619_v45, %v617_v46 }
 0x131   : > { %343 = vst.msk [vmem:[%s224_s20] sm:$0xff] %vm342_vm7, %v340_v47 }
 0x134   : > { %v309_v48 = vpop.f32.mrf.mxu0  ;;  %v323_v49 = vpop.f32.mrf.mxu1 }
 0x135   : > { %vm328_vm10 = vcmp.gt.f32.partialorder %v323_v49, 0.5 }
 0x136   : > { %v618_v50 = vsel %vm328_vm10, 1.0, %v749_v44 }
 0x137   : > { %v341_v51 = vadd.f32 %v619_v45, %v618_v50 }
 0x139   : > { %344 = vst.msk [vmem:[%s224_s20 + $0x8] sm:$0xff] %vm342_vm7, %v341_v51 }
 0x13a   : > { %712 = shalt.err (!%p709_p3)
}
 0x13b   : > { %s750_s9 = smov 128   ;;  %s751_s10 = smov 8   ;;  %vm463_vm13 = vcmask 46080  }
 0x13c   : > { %632 = dma.vmem_to_hbm [thread:$0]  (%p815_p5), %s485_s22, 256, %s487_s23, %s467_s19, %s750_s9, %s750_s9, %s751_s10   ;;  %v325_v52 = vpop.f32.mrf.mxu1 }
 0x13d   : > { %s248_s13 = scalar_lea.vmem %s890_s2, %s826_s28  ;;  %s255_s20 = scalar_lea.vmem %s892_s4, %s826_s28 }
 0x13e   : > { %v453_v56 = vld [vmem:[%s248_s13] sm:$0x3f]  ;;  %v454_v58 = vld [vmem:[%s248_s13 + $0x8] sm:$0x3f] }
 0x14d   : > { %v425_v53 = vpop.f32.mrf.mxu2  ;;  %v441_v54 = vpop.f32.mrf.mxu3 }
 0x14e   : > { %vm445_vm11 = vcmp.gt.f32.partialorder %v425_v53, 0.0  ;;  %vm446_vm12 = vcmp.gt.f32.partialorder %v441_v54, 0.0 }
 0x14f   : > { %v622_v55 = vsel %vm445_vm11, 1.0, %v749_v44  ;;  %v623_v57 = vsel %vm446_vm12, 1.0, %v749_v44 }
 0x150   : > { %v451_v59 = vadd.f32 %v622_v55, %v619_v45  ;;  %v452_v60 = vadd.f32 %v623_v57, %v619_v45 }
 0x152   : > { %v455_v61 = vadd.f32 %v453_v56, %v451_v59  ;;  %v456_v62 = vadd.f32 %v454_v58, %v452_v60 }
 0x154   : > { %vm457_vm14 = vcmp.gt.f32.partialorder %v455_v61, 0.0  ;;  %vm458_vm15 = vcmp.gt.f32.partialorder %v456_v62, 0.0 }
 0x155   : > { %v624_v63 = vsel %vm457_vm14, 1.0, %v749_v44  ;;  %v625_v0 = vsel %vm458_vm15, 1.0, %v749_v44  ;;  %v427_v1 = vpop.f32.mrf.mxu2  ;;  %v443_v2 = vpop.f32.mrf.mxu3 }
 0x156   : > { %464 = vst.msk [vmem:[%s255_s20] sm:$0x3f] %vm463_vm13, %v624_v63 }
 0x157   : > { %465 = vst.msk [vmem:[%s255_s20 + $0x8] sm:$0x3f] %vm463_vm13, %v625_v0 }
 0x158 PF: > { %p638_p4 = scmp.ge.s32.totalorder %s747_s18, 2  ;;  %s505_s22 = sand.u32 1, %s735_s15  }
 0x159   : > { %s506_s23 = scalar_lea.sflag [#allocation3], %s505_s22 }
 0x15a   : > { %p635_p5 = pnand %p638_p4, %p819_p6 }
 0x15c   : > { %p636_p7 = pneg %p635_p5 }
 0x15e   : > { %730 = dma.done.wait (%p636_p7), %s506_s23, 256  }
 0x15f   : > { %732 = vsyncadd (%p636_p7), %s506_s23, 4294967040  ;;  %p15_p8 = scmp.ge.s32.totalorder %s802_s21, 4   ;;  %s895_s15 = smov %s739_s16 }
 0x160   : > { %s896_s16 = smov %s743_s17  ;;  %s897_s17 = smov %s813_s24 }
 0x161   : > { %s898_s18 = smov %s802_s21  ;;  %17 = sbr.rel (!%p15_p8) target bundleno = 3 (0x3), region = 85 }
 0x166   :  { %520 = vsyncpa [#allocation3], 1 }
 0x167   :  { %522 = vsyncpa [#allocation3 + $0x1], 1 }

</bundles_post_ra>
